<compile_context>
chip_gen: v5e
topology: v5e:2x2
jax: 0.10.0
libtpu: 0.0.40
codegen_flags: <defaults>
</compile_context>

<pallas_src>
import math

import jax
import jax.numpy as jnp
import numpy as np
from jax import lax
from jax.experimental import pallas as pl
from jax.experimental.pallas import tpu as pltpu


def _mha_flash_kernel(xq_ref, xkv_ref, wq_ref, wk_ref, wv_ref, o_ref,
                      m_ref, l_ref, acc_ref, osum_ref):
    q_idx = pl.program_id(1)
    h_idx = pl.program_id(2)
    kv_idx = pl.program_id(3)
    num_heads = pl.num_programs(2)
    num_kv = pl.num_programs(3)

    Bb, Tq, Dp = xq_ref.shape
    Tk = xkv_ref.shape[1]
    K = wq_ref.shape[2]
    dot_dt = wv_ref.dtype                       # matmul operand dtype (f32 or bf16)

    # --- per-head online-softmax state (re)initialized at the first KV tile ---
    @pl.when(kv_idx == 0)
    def _():
        m_ref[...] = jnp.full(m_ref.shape, -jnp.inf, dtype=m_ref.dtype)
        l_ref[...] = jnp.zeros(l_ref.shape, dtype=l_ref.dtype)
        acc_ref[...] = jnp.zeros(acc_ref.shape, dtype=acc_ref.dtype)

    # --- head-sum accumulator (re)initialized at the first (head, KV) step ----
    @pl.when((h_idx == 0) & (kv_idx == 0))
    def _():
        osum_ref[...] = jnp.zeros(osum_ref.shape, dtype=osum_ref.dtype)

    # --- causal skip: KV tiles entirely in the future contribute nothing ------
    q_last = (q_idx + 1) * Tq - 1
    kv_first = kv_idx * Tk

    @pl.when(kv_first <= q_last)
    def _():
        xq = xq_ref[...]                        # (Bb, Tq, Dp)
        xkv = xkv_ref[...]                      # (Bb, Tk, Dp)
        wq = wq_ref[0]                          # (Dp, K)   scale folded in
        wk = wk_ref[0]                          # (Dp, K)
        wv = wv_ref[0]                          # (Dp, Dp)

        # Projections on the flattened (Bb*T, Dp) block (fills sublanes).
        q = jnp.dot(xq.reshape(Bb * Tq, Dp), wq,
                    preferred_element_type=jnp.float32).reshape(Bb, Tq, K)
        k = jnp.dot(xkv.reshape(Bb * Tk, Dp), wk,
                    preferred_element_type=jnp.float32).reshape(Bb, Tk, K)
        v = jnp.dot(xkv.reshape(Bb * Tk, Dp), wv,
                    preferred_element_type=jnp.float32).reshape(Bb, Tk, Dp)

        # Batched q @ k^T contracting the last dims (no in-kernel transpose; no
        # cross-batch attention when Bb > 1).
        s = jnp.einsum("bqc,bkc->bqk", q.astype(dot_dt), k.astype(dot_dt),
                       preferred_element_type=jnp.float32)      # (Bb, Tq, Tk)

        # Causal mask from iota (no tril input / DMA).  The first KV tile always
        # contains an unmasked key for every query row, so -inf never yields NaN.
        rows = q_idx * Tq + lax.broadcasted_iota(jnp.int32, (Bb, Tq, Tk), 1)
        cols = kv_idx * Tk + lax.broadcasted_iota(jnp.int32, (Bb, Tq, Tk), 2)
        s = jnp.where(rows >= cols, s, -jnp.inf)

        # Online softmax update (elementwise math in f32; exp runs on the EUP).
        m_prev = m_ref[...]
        m_new = jnp.maximum(m_prev, jnp.max(s, axis=-1, keepdims=True))
        alpha = jnp.exp(m_prev - m_new)
        p = jnp.exp(s - m_new)
        l_ref[...] = alpha * l_ref[...] + jnp.sum(p, axis=-1, keepdims=True)
        acc_ref[...] = alpha * acc_ref[...] + jnp.einsum(
            "bqk,bkd->bqd", p.astype(dot_dt), v.astype(dot_dt),
            preferred_element_type=jnp.float32)
        m_ref[...] = m_new

    # --- after the last KV tile: normalize and add this head's contribution ---
    @pl.when(kv_idx == num_kv - 1)
    def _():
        osum_ref[...] += acc_ref[...] * pl.reciprocal(l_ref[...], approx=True)

    # --- after the last head: single lane-dense store of the summed output ----
    @pl.when((kv_idx == num_kv - 1) & (h_idx == num_heads - 1))
    def _():
        o_ref[...] = osum_ref[...].astype(o_ref.dtype)


def _pick_tile(total: int, target: int) -> int:
    """Largest divisor of `total` that is <= target and a multiple of 8, else total."""
    if total <= target:
        return total
    for cand in range(target, 7, -1):
        if total % cand == 0 and cand % 8 == 0:
            return cand
    return total


def multi_head_attention(x, wq, wk, wv, head_size, *, compute_dtype=None,
                         q_block=128, kv_block=512):
    """x: (B,T,D); wq,wk: (H,K,D); wv: (H,D,D)  (PyTorch Linear layout (out,in)).

    Returns (B,T,D) = sum_h softmax(mask(q_h k_h^T) / sqrt(head_size)) @ v_h.
    """
    B, T, D = x.shape
    H, K, _ = wq.shape
    orig_dtype = x.dtype
    cdt = jnp.dtype(compute_dtype) if compute_dtype is not None else jnp.dtype(orig_dtype)

    Dp = int(pl.cdiv(D, 128)) * 128              # lane-dense padded embed dim
    Tq = _pick_tile(T, q_block)
    Tk = _pick_tile(T, kv_block)
    nq, nkv = T // Tq, T // Tk

    # Batch packing: fill sublanes when T is small, but keep >= 2 blocks on the
    # (parallel) batch axis when possible so both v7x TensorCores get work.
    Bb = max(1, min(B // 2 if B >= 2 else 1, max(1, 128 // Tq)))
    while B % Bb:
        Bb -= 1
    nb = B // Bb

    scale = 1.0 / math.sqrt(head_size)

    # One-time host-side weight prep: (out,in) -> (in,out), scale folded into Wq.
    wq_p = jnp.transpose(wq, (0, 2, 1)).astype(jnp.float32) * scale   # (H, D, K)
    wk_p = jnp.transpose(wk, (0, 2, 1))                               # (H, D, K)
    wv_p = jnp.transpose(wv, (0, 2, 1))                               # (H, D, D)
    x_c = x
    if Dp != D:   # zero-padded embed dim is inert because padded weight rows are zero
        pad_d = ((0, 0), (0, Dp - D), (0, 0))
        wq_p = jnp.pad(wq_p, pad_d)
        wk_p = jnp.pad(wk_p, pad_d)
        wv_p = jnp.pad(wv_p, ((0, 0), (0, Dp - D), (0, Dp - D)))
        x_c = jnp.pad(x_c, ((0, 0), (0, 0), (0, Dp - D)))
    wq_p = wq_p.astype(cdt)
    wk_p = wk_p.astype(cdt)
    wv_p = wv_p.astype(cdt)
    x_c = x_c.astype(cdt)

    # VMEM budget from the actual block sizes (double-buffered inputs/output plus
    # f32 scratch), clamped so it is valid on every generation (v7x has 64 MiB).
    itm = jnp.dtype(cdt).itemsize
    oitm = jnp.dtype(orig_dtype).itemsize
    buffered = 2 * (Bb * Tq * Dp * itm            # x (query rows)
                    + Bb * Tk * Dp * itm          # x (key/value rows)
                    + 2 * Dp * K * itm            # per-head Wq + Wk
                    + Dp * Dp * itm               # per-head Wv
                    + Bb * Tq * Dp * oitm)        # output block
    scratch = 4 * Bb * Tq * (2 * 128 + 2 * Dp)    # m, l (lane-padded), acc, head-sum
    vmem_limit = max(32 << 20,
                     min(int(1.5 * (buffered + scratch)) + (8 << 20), 64 << 20))

    out = pl.pallas_call(
        _mha_flash_kernel,
        out_shape=jax.ShapeDtypeStruct((B, T, Dp), orig_dtype),
        grid_spec=pltpu.PrefetchScalarGridSpec(
            num_scalar_prefetch=0,
            grid=(nb, nq, H, nkv),
            in_specs=[
                pl.BlockSpec((Bb, Tq, Dp), lambda b, q, h, kv: (b, q, 0)),   # x (queries)
                pl.BlockSpec((Bb, Tk, Dp), lambda b, q, h, kv: (b, kv, 0)),  # x (keys/values)
                pl.BlockSpec((1, Dp, K), lambda b, q, h, kv: (h, 0, 0)),     # Wq (per head)
                pl.BlockSpec((1, Dp, K), lambda b, q, h, kv: (h, 0, 0)),     # Wk (per head)
                pl.BlockSpec((1, Dp, Dp), lambda b, q, h, kv: (h, 0, 0)),    # Wv (per head)
            ],
            out_specs=pl.BlockSpec((Bb, Tq, Dp), lambda b, q, h, kv: (b, q, 0)),
            scratch_shapes=[
                pltpu.VMEM((Bb, Tq, 1), jnp.float32),     # running max m
                pltpu.VMEM((Bb, Tq, 1), jnp.float32),     # running denom l
                pltpu.VMEM((Bb, Tq, Dp), jnp.float32),    # per-head accumulator
                pltpu.VMEM((Bb, Tq, Dp), jnp.float32),    # head-sum accumulator
            ],
        ),
        compiler_params=pltpu.CompilerParams(
            dimension_semantics=("parallel", "parallel", "arbitrary", "arbitrary"),
            vmem_limit_bytes=vmem_limit,
        ),
    )(x_c, x_c, wq_p, wk_p, wv_p)

    return out if Dp == D else out[:, :, :D]


def _reference(x, wq, wk, wv, head_size):
    """Pure-JAX reference mirroring the PyTorch module exactly."""
    T = x.shape[1]
    tril = jnp.tril(jnp.ones((T, T), dtype=jnp.float32))
    outs = []
    for h in range(wq.shape[0]):
        q = x @ wq[h].T            # (B,T,K)
        k = x @ wk[h].T            # (B,T,K)
        v = x @ wv[h].T            # (B,T,D)
        s = jnp.einsum("btk,bsk->bts", q, k)
        s = jnp.where(tril == 0.0, -jnp.inf, s) / math.sqrt(head_size)
        a = jax.nn.softmax(s, axis=2)
        outs.append(jnp.einsum("bts,bsd->btd", a, v))
    return sum(outs)


if __name__ == "__main__":
    # Small shapes consistent with the module's forward.
    B, T, D = 2, 8, 32          # batch, context_window_size, embed_size
    H, K = 4, 8                 # num_heads, head_size

    key = jax.random.PRNGKey(0)
    kx, kq, kk, kv = jax.random.split(key, 4)

    bound = 1.0 / math.sqrt(D)  # PyTorch Linear-style uniform init
    x = jax.random.normal(kx, (B, T, D), dtype=jnp.float32)
    wq = jax.random.uniform(kq, (H, K, D), minval=-bound, maxval=bound, dtype=jnp.float32)
    wk = jax.random.uniform(kk, (H, K, D), minval=-bound, maxval=bound, dtype=jnp.float32)
    wv = jax.random.uniform(kv, (H, D, D), minval=-bound, maxval=bound, dtype=jnp.float32)

    ref = _reference(x, wq, wk, wv, head_size=K)

    # f32 MXU path (matches the PyTorch module; tolerance covers the EUP
    # approximate reciprocal in the softmax normalization).
    out = jax.block_until_ready(multi_head_attention(x, wq, wk, wv, head_size=K))
    np.testing.assert_allclose(np.asarray(out), np.asarray(ref), rtol=5e-3, atol=5e-3)

    # bf16 MXU-operand path (recommended on v6e/v7x): bf16 matmul inputs with
    # f32 accumulation and f32 softmax math; looser tolerance for bf16 rounding.
    out_bf16 = jax.block_until_ready(
        multi_head_attention(x, wq, wk, wv, head_size=K, compute_dtype=jnp.bfloat16))
    np.testing.assert_allclose(np.asarray(out_bf16), np.asarray(ref), rtol=5e-2, atol=5e-2)

    print("KERNEL_OK")
</pallas_src>

<mosaic_0001>
module attributes {stable_mosaic.version = 11 : i64} {
  func.func @_mha_flash_kernel(%arg0: i32, %arg1: i32, %arg2: i32, %arg3: i32, %arg4: memref<1x8x128xf32, #tpu.memory_space<vmem>>, %arg5: memref<1x8x128xf32, #tpu.memory_space<vmem>>, %arg6: memref<1x128x8xf32, #tpu.memory_space<vmem>>, %arg7: memref<1x128x8xf32, #tpu.memory_space<vmem>>, %arg8: memref<1x128x128xf32, #tpu.memory_space<vmem>>, %arg9: memref<1x8x128xf32, #tpu.memory_space<vmem>>, %arg10: memref<1x8x1xf32, #tpu.memory_space<vmem>>, %arg11: memref<1x8x1xf32, #tpu.memory_space<vmem>>, %arg12: memref<1x8x128xf32, #tpu.memory_space<vmem>>, %arg13: memref<1x8x128xf32, #tpu.memory_space<vmem>>) attributes {dimension_semantics = [#tpu.dimension_semantics<parallel>, #tpu.dimension_semantics<parallel>, #tpu.dimension_semantics<arbitrary>, #tpu.dimension_semantics<arbitrary>], iteration_bounds = array<i64: 2, 1, 4, 1>, scalar_prefetch = 0 : i64, scratch_operands = 4 : i64, tpu.core_type = #tpu.core_type<tc>, window_params = [{transform_indices = @transform_0, window_bounds = array<i64: 1, 8, 128>}, {transform_indices = @transform_1, window_bounds = array<i64: 1, 8, 128>}, {transform_indices = @transform_2, window_bounds = array<i64: 1, 128, 8>}, {transform_indices = @transform_3, window_bounds = array<i64: 1, 128, 8>}, {transform_indices = @transform_4, window_bounds = array<i64: 1, 128, 128>}, {transform_indices = @transform_5, window_bounds = array<i64: 1, 8, 128>}]} {
    %c0_i32 = arith.constant 0 : i32
    %0 = arith.cmpi eq, %arg3, %c0_i32 : i32
    %1 = arith.extui %0 : i1 to i32
    %c0_i32_0 = arith.constant 0 : i32
    %2 = arith.cmpi ne, %1, %c0_i32_0 : i32
    scf.if %2 {
      %cst = arith.constant 0xFF800000 : f32
      %23 = vector.broadcast %cst : f32 to vector<1x8x1xf32>
      %c0 = arith.constant 0 : index
      %c0_11 = arith.constant 0 : index
      %c0_12 = arith.constant 0 : index
      %24 = vector.load %arg10[%c0, %c0_11, %c0_12] : memref<1x8x1xf32, #tpu.memory_space<vmem>>, vector<1x8x1xf32>
      tpu.vector_store %arg10[%c0, %c0_11, %c0_12], %23 {strides = array<i32>} : memref<1x8x1xf32, #tpu.memory_space<vmem>>, vector<1x8x1xf32>,
      %cst_13 = arith.constant 0.000000e+00 : f32
      %25 = vector.broadcast %cst_13 : f32 to vector<1x8x1xf32>
      %c0_14 = arith.constant 0 : index
      %c0_15 = arith.constant 0 : index
      %c0_16 = arith.constant 0 : index
      %26 = vector.load %arg11[%c0_14, %c0_15, %c0_16] : memref<1x8x1xf32, #tpu.memory_space<vmem>>, vector<1x8x1xf32>
      tpu.vector_store %arg11[%c0_14, %c0_15, %c0_16], %25 {strides = array<i32>} : memref<1x8x1xf32, #tpu.memory_space<vmem>>, vector<1x8x1xf32>,
      %cst_17 = arith.constant 0.000000e+00 : f32
      %27 = vector.broadcast %cst_17 : f32 to vector<1x8x128xf32>
      %c0_18 = arith.constant 0 : index
      %c0_19 = arith.constant 0 : index
      %c0_20 = arith.constant 0 : index
      %28 = vector.load %arg12[%c0_18, %c0_19, %c0_20] : memref<1x8x128xf32, #tpu.memory_space<vmem>>, vector<1x8x128xf32>
      tpu.vector_store %arg12[%c0_18, %c0_19, %c0_20], %27 {strides = array<i32>} : memref<1x8x128xf32, #tpu.memory_space<vmem>>, vector<1x8x128xf32>,
    } else {
    }
    %c0_i32_1 = arith.constant 0 : i32
    %3 = arith.cmpi eq, %arg2, %c0_i32_1 : i32
    %c0_i32_2 = arith.constant 0 : i32
    %4 = arith.cmpi eq, %arg3, %c0_i32_2 : i32
    %5 = arith.andi %3, %4 : i1
    %6 = arith.extui %5 : i1 to i32
    %c0_i32_3 = arith.constant 0 : i32
    %7 = arith.cmpi ne, %6, %c0_i32_3 : i32
    scf.if %7 {
      %cst = arith.constant 0.000000e+00 : f32
      %23 = vector.broadcast %cst : f32 to vector<1x8x128xf32>
      %c0 = arith.constant 0 : index
      %c0_11 = arith.constant 0 : index
      %c0_12 = arith.constant 0 : index
      %24 = vector.load %arg13[%c0, %c0_11, %c0_12] : memref<1x8x128xf32, #tpu.memory_space<vmem>>, vector<1x8x128xf32>
      tpu.vector_store %arg13[%c0, %c0_11, %c0_12], %23 {strides = array<i32>} : memref<1x8x128xf32, #tpu.memory_space<vmem>>, vector<1x8x128xf32>,
    } else {
    }
    %c1_i32 = arith.constant 1 : i32
    %8 = arith.addi %arg1, %c1_i32 : i32
    %c8_i32 = arith.constant 8 : i32
    %9 = arith.muli %8, %c8_i32 : i32
    %c1_i32_4 = arith.constant 1 : i32
    %10 = arith.subi %9, %c1_i32_4 : i32
    %c8_i32_5 = arith.constant 8 : i32
    %11 = arith.muli %arg3, %c8_i32_5 : i32
    %12 = arith.cmpi sle, %11, %10 : i32
    %13 = arith.extui %12 : i1 to i32
    %c0_i32_6 = arith.constant 0 : i32
    %14 = arith.cmpi ne, %13, %c0_i32_6 : i32
    scf.if %14 {
      %c0 = arith.constant 0 : index
      %c0_11 = arith.constant 0 : index
      %c0_12 = arith.constant 0 : index
      %23 = vector.load %arg4[%c0, %c0_11, %c0_12] : memref<1x8x128xf32, #tpu.memory_space<vmem>>, vector<1x8x128xf32>
      %c0_13 = arith.constant 0 : index
      %c0_14 = arith.constant 0 : index
      %c0_15 = arith.constant 0 : index
      %24 = vector.load %arg5[%c0_13, %c0_14, %c0_15] : memref<1x8x128xf32, #tpu.memory_space<vmem>>, vector<1x8x128xf32>
      %c0_16 = arith.constant 0 : index
      %c0_17 = arith.constant 0 : index
      %c0_18 = arith.constant 0 : index
      %25 = vector.load %arg6[%c0_16, %c0_17, %c0_18] : memref<1x128x8xf32, #tpu.memory_space<vmem>>, vector<1x128x8xf32>
      %26 = vector.shape_cast %25 : vector<1x128x8xf32> to vector<128x8xf32>
      %c0_19 = arith.constant 0 : index
      %c0_20 = arith.constant 0 : index
      %c0_21 = arith.constant 0 : index
      %27 = vector.load %arg7[%c0_19, %c0_20, %c0_21] : memref<1x128x8xf32, #tpu.memory_space<vmem>>, vector<1x128x8xf32>
      %28 = vector.shape_cast %27 : vector<1x128x8xf32> to vector<128x8xf32>
      %c0_22 = arith.constant 0 : index
      %c0_23 = arith.constant 0 : index
      %c0_24 = arith.constant 0 : index
      %29 = vector.load %arg8[%c0_22, %c0_23, %c0_24] : memref<1x128x128xf32, #tpu.memory_space<vmem>>, vector<1x128x128xf32>
      %30 = vector.shape_cast %29 : vector<1x128x128xf32> to vector<128x128xf32>
      %31 = vector.shape_cast %23 : vector<1x8x128xf32> to vector<8x128xf32>
      %cst = arith.constant dense<0.000000e+00> : vector<8x8xf32>
      %32 = tpu.matmul %31, %26, %cst {dimension_numbers = #tpu.dot_dimension_numbers<[1], [0], [0], [1], [0, 0, 1, 1], [], []>} : vector<8x128xf32>, vector<128x8xf32>, vector<8x8xf32> -> vector<8x8xf32>
      %33 = vector.shape_cast %32 : vector<8x8xf32> to vector<1x8x8xf32>
      %34 = vector.shape_cast %24 : vector<1x8x128xf32> to vector<8x128xf32>
      %cst_25 = arith.constant dense<0.000000e+00> : vector<8x8xf32>
      %35 = tpu.matmul %34, %28, %cst_25 {dimension_numbers = #tpu.dot_dimension_numbers<[1], [0], [0], [1], [0, 0, 1, 1], [], []>} : vector<8x128xf32>, vector<128x8xf32>, vector<8x8xf32> -> vector<8x8xf32>
      %36 = vector.shape_cast %35 : vector<8x8xf32> to vector<1x8x8xf32>
      %37 = vector.shape_cast %24 : vector<1x8x128xf32> to vector<8x128xf32>
      %cst_26 = arith.constant dense<0.000000e+00> : vector<8x128xf32>
      %38 = tpu.matmul %37, %30, %cst_26 {dimension_numbers = #tpu.dot_dimension_numbers<[1], [0], [0], [1], [0, 0, 1, 1], [], []>} : vector<8x128xf32>, vector<128x128xf32>, vector<8x128xf32> -> vector<8x128xf32>
      %39 = vector.shape_cast %38 : vector<8x128xf32> to vector<1x8x128xf32>
      "tpu.trace_start"() <{level = 10 : i32, message = "bqc,bkc->bqk"}> : () -> ()
      %cst_27 = arith.constant dense<0.000000e+00> : vector<1x8x8xf32>
      %40 = tpu.matmul %33, %36, %cst_27 {dimension_numbers = #tpu.dot_dimension_numbers<[2], [2], [1], [1], [0, 0, 0, 1, 1, 1], [0], [0]>} : vector<1x8x8xf32>, vector<1x8x8xf32>, vector<1x8x8xf32> -> vector<1x8x8xf32>
      "tpu.trace_stop"() : () -> ()
      %c8_i32_28 = arith.constant 8 : i32
      %41 = arith.muli %arg1, %c8_i32_28 : i32
      %42 = tpu.iota {dimensions = array<i32: 1>} : vector<1x8x8xi32>
      %43 = vector.broadcast %41 : i32 to vector<1x8x8xi32>
      %44 = arith.addi %43, %42 : vector<1x8x8xi32>
      %c8_i32_29 = arith.constant 8 : i32
      %45 = arith.muli %arg3, %c8_i32_29 : i32
      %46 = tpu.iota {dimensions = array<i32: 2>} : vector<1x8x8xi32>
      %47 = vector.broadcast %45 : i32 to vector<1x8x8xi32>
      %48 = arith.addi %47, %46 : vector<1x8x8xi32>
      %49 = arith.cmpi sge, %44, %48 : vector<1x8x8xi32>
      %cst_30 = arith.constant 0xFF800000 : f32
      %50 = vector.broadcast %cst_30 : f32 to vector<1x8x8xf32>
      %51 = arith.select %49, %40, %50 : vector<1x8x8xi1>, vector<1x8x8xf32>
      %c0_31 = arith.constant 0 : index
      %c0_32 = arith.constant 0 : index
      %c0_33 = arith.constant 0 : index
      %52 = vector.load %arg10[%c0_31, %c0_32, %c0_33] : memref<1x8x1xf32, #tpu.memory_space<vmem>>, vector<1x8x1xf32>
      %cst_34 = arith.constant dense<0xFF800000> : vector<1x8xf32>
      %53 = vector.multi_reduction <maximumf>, %51, %cst_34 [2] : vector<1x8x8xf32> to vector<1x8xf32>
      %54 = vector.shape_cast %53 : vector<1x8xf32> to vector<1x8x1xf32>
      %55 = arith.maximumf %52, %54 : vector<1x8x1xf32>
      %56 = arith.subf %52, %55 : vector<1x8x1xf32>
      %57 = math.exp %56 : vector<1x8x1xf32>
      %58 = vector.broadcast %55 : vector<1x8x1xf32> to vector<1x8x8xf32>
      %59 = arith.subf %51, %58 : vector<1x8x8xf32>
      %60 = math.exp %59 : vector<1x8x8xf32>
      %c0_35 = arith.constant 0 : index
      %c0_36 = arith.constant 0 : index
      %c0_37 = arith.constant 0 : index
      %61 = vector.load %arg11[%c0_35, %c0_36, %c0_37] : memref<1x8x1xf32, #tpu.memory_space<vmem>>, vector<1x8x1xf32>
      %62 = arith.mulf %57, %61 : vector<1x8x1xf32>
      %cst_38 = arith.constant dense<0.000000e+00> : vector<1x8xf32>
      %63 = vector.multi_reduction <add>, %60, %cst_38 [2] : vector<1x8x8xf32> to vector<1x8xf32>
      %64 = vector.shape_cast %63 : vector<1x8xf32> to vector<1x8x1xf32>
      %65 = arith.addf %62, %64 : vector<1x8x1xf32>
      %c0_39 = arith.constant 0 : index
      %c0_40 = arith.constant 0 : index
      %c0_41 = arith.constant 0 : index
      %66 = vector.load %arg11[%c0_39, %c0_40, %c0_41] : memref<1x8x1xf32, #tpu.memory_space<vmem>>, vector<1x8x1xf32>
      tpu.vector_store %arg11[%c0_39, %c0_40, %c0_41], %65 {strides = array<i32>} : memref<1x8x1xf32, #tpu.memory_space<vmem>>, vector<1x8x1xf32>,
      %c0_42 = arith.constant 0 : index
      %c0_43 = arith.constant 0 : index
      %c0_44 = arith.constant 0 : index
      %67 = vector.load %arg12[%c0_42, %c0_43, %c0_44] : memref<1x8x128xf32, #tpu.memory_space<vmem>>, vector<1x8x128xf32>
      %68 = vector.broadcast %57 : vector<1x8x1xf32> to vector<1x8x128xf32>
      %69 = arith.mulf %68, %67 : vector<1x8x128xf32>
      "tpu.trace_start"() <{level = 10 : i32, message = "bqk,bkd->bqd"}> : () -> ()
      %cst_45 = arith.constant dense<0.000000e+00> : vector<1x8x128xf32>
      %70 = tpu.matmul %60, %39, %cst_45 {dimension_numbers = #tpu.dot_dimension_numbers<[2], [1], [1], [2], [0, 0, 0, 1, 1, 2], [0], [0]>} : vector<1x8x8xf32>, vector<1x8x128xf32>, vector<1x8x128xf32> -> vector<1x8x128xf32>
      "tpu.trace_stop"() : () -> ()
      %71 = arith.addf %69, %70 : vector<1x8x128xf32>
      %c0_46 = arith.constant 0 : index
      %c0_47 = arith.constant 0 : index
      %c0_48 = arith.constant 0 : index
      %72 = vector.load %arg12[%c0_46, %c0_47, %c0_48] : memref<1x8x128xf32, #tpu.memory_space<vmem>>, vector<1x8x128xf32>
      tpu.vector_store %arg12[%c0_46, %c0_47, %c0_48], %71 {strides = array<i32>} : memref<1x8x128xf32, #tpu.memory_space<vmem>>, vector<1x8x128xf32>,
      %c0_49 = arith.constant 0 : index
      %c0_50 = arith.constant 0 : index
      %c0_51 = arith.constant 0 : index
      %73 = vector.load %arg10[%c0_49, %c0_50, %c0_51] : memref<1x8x1xf32, #tpu.memory_space<vmem>>, vector<1x8x1xf32>
      tpu.vector_store %arg10[%c0_49, %c0_50, %c0_51], %55 {strides = array<i32>} : memref<1x8x1xf32, #tpu.memory_space<vmem>>, vector<1x8x1xf32>,
    } else {
    }
    %c0_i32_7 = arith.constant 0 : i32
    %15 = arith.cmpi eq, %arg3, %c0_i32_7 : i32
    %16 = arith.extui %15 : i1 to i32
    %c0_i32_8 = arith.constant 0 : i32
    %17 = arith.cmpi ne, %16, %c0_i32_8 : i32
    scf.if %17 {
      %c0 = arith.constant 0 : index
      %c0_11 = arith.constant 0 : index
      %c0_12 = arith.constant 0 : index
      %23 = vector.load %arg13[%c0, %c0_11, %c0_12] : memref<1x8x128xf32, #tpu.memory_space<vmem>>, vector<1x8x128xf32>
      %c0_13 = arith.constant 0 : index
      %c0_14 = arith.constant 0 : index
      %c0_15 = arith.constant 0 : index
      %24 = vector.load %arg12[%c0_13, %c0_14, %c0_15] : memref<1x8x128xf32, #tpu.memory_space<vmem>>, vector<1x8x128xf32>
      %c0_16 = arith.constant 0 : index
      %c0_17 = arith.constant 0 : index
      %c0_18 = arith.constant 0 : index
      %25 = vector.load %arg11[%c0_16, %c0_17, %c0_18] : memref<1x8x1xf32, #tpu.memory_space<vmem>>, vector<1x8x1xf32>
      %26 = tpu.reciprocal %25 {approx = true} : vector<1x8x1xf32> -> vector<1x8x1xf32>
      %27 = vector.broadcast %26 : vector<1x8x1xf32> to vector<1x8x128xf32>
      %28 = arith.mulf %24, %27 : vector<1x8x128xf32>
      %29 = arith.addf %23, %28 : vector<1x8x128xf32>
      %c0_19 = arith.constant 0 : index
      %c0_20 = arith.constant 0 : index
      %c0_21 = arith.constant 0 : index
      %30 = vector.load %arg13[%c0_19, %c0_20, %c0_21] : memref<1x8x128xf32, #tpu.memory_space<vmem>>, vector<1x8x128xf32>
      tpu.vector_store %arg13[%c0_19, %c0_20, %c0_21], %29 {strides = array<i32>} : memref<1x8x128xf32, #tpu.memory_space<vmem>>, vector<1x8x128xf32>,
    } else {
    }
    %c0_i32_9 = arith.constant 0 : i32
    %18 = arith.cmpi eq, %arg3, %c0_i32_9 : i32
    %c3_i32 = arith.constant 3 : i32
    %19 = arith.cmpi eq, %arg2, %c3_i32 : i32
    %20 = arith.andi %18, %19 : i1
    %21 = arith.extui %20 : i1 to i32
    %c0_i32_10 = arith.constant 0 : i32
    %22 = arith.cmpi ne, %21, %c0_i32_10 : i32
    scf.if %22 {
      %c0 = arith.constant 0 : index
      %c0_11 = arith.constant 0 : index
      %c0_12 = arith.constant 0 : index
      %23 = vector.load %arg13[%c0, %c0_11, %c0_12] : memref<1x8x128xf32, #tpu.memory_space<vmem>>, vector<1x8x128xf32>
      %c0_13 = arith.constant 0 : index
      %c0_14 = arith.constant 0 : index
      %c0_15 = arith.constant 0 : index
      %24 = vector.load %arg9[%c0_13, %c0_14, %c0_15] : memref<1x8x128xf32, #tpu.memory_space<vmem>>, vector<1x8x128xf32>
      tpu.vector_store %arg9[%c0_13, %c0_14, %c0_15], %23 {strides = array<i32>} : memref<1x8x128xf32, #tpu.memory_space<vmem>>, vector<1x8x128xf32>,
    } else {
    }
    return
  }
  func.func @transform_0(%arg0: i32, %arg1: i32, %arg2: i32, %arg3: i32) -> (i32, i32, i32) {
    %c0_i32 = arith.constant 0 : i32
    %c0_i32_0 = arith.constant 0 : i32
    return %arg0, %arg1, %c0_i32 : i32, i32, i32
  }
  func.func @transform_1(%arg0: i32, %arg1: i32, %arg2: i32, %arg3: i32) -> (i32, i32, i32) {
    %c0_i32 = arith.constant 0 : i32
    %c0_i32_0 = arith.constant 0 : i32
    return %arg0, %arg3, %c0_i32 : i32, i32, i32
  }
  func.func @transform_2(%arg0: i32, %arg1: i32, %arg2: i32, %arg3: i32) -> (i32, i32, i32) {
    %c0_i32 = arith.constant 0 : i32
    %c0_i32_0 = arith.constant 0 : i32
    %c0_i32_1 = arith.constant 0 : i32
    return %arg2, %c0_i32, %c0_i32_0 : i32, i32, i32
  }
  func.func @transform_3(%arg0: i32, %arg1: i32, %arg2: i32, %arg3: i32) -> (i32, i32, i32) {
    %c0_i32 = arith.constant 0 : i32
    %c0_i32_0 = arith.constant 0 : i32
    %c0_i32_1 = arith.constant 0 : i32
    return %arg2, %c0_i32, %c0_i32_0 : i32, i32, i32
  }
  func.func @transform_4(%arg0: i32, %arg1: i32, %arg2: i32, %arg3: i32) -> (i32, i32, i32) {
    %c0_i32 = arith.constant 0 : i32
    %c0_i32_0 = arith.constant 0 : i32
    %c0_i32_1 = arith.constant 0 : i32
    return %arg2, %c0_i32, %c0_i32_0 : i32, i32, i32
  }
  func.func @transform_5(%arg0: i32, %arg1: i32, %arg2: i32, %arg3: i32) -> (i32, i32, i32) {
    %c0_i32 = arith.constant 0 : i32
    %c0_i32_0 = arith.constant 0 : i32
    return %arg0, %arg1, %c0_i32 : i32, i32, i32
  }
}

</mosaic_0001>

<bundles_post_ra>
// kernel: tpu_custom_call.1
= control target key start
LH: loop header
LB: loop body
LE: loop exit
PB: predicated region body
PF: predicated region fallthrough
CT: control target
= control target key end

     0   :  { %s1201_s0 = inlined_call_operand.vmem [shape: f32[2,8,128], index: 0, kind: input, shape index: {}]   ;;  %s1202_s1 = inlined_call_operand.vmem [shape: f32[2,8,128], index: 1, kind: input, shape index: {}]   ;;  %s1203_s2 = inlined_call_operand.vmem [shape: f32[4,128,8], index: 2, kind: input, shape index: {}]   ;;  %s1204_s3 = inlined_call_operand.vmem [shape: f32[4,128,8], index: 3, kind: input, shape index: {}]   ;;  %s1205_s4 = inlined_call_operand.vmem [shape: f32[4,128,128], index: 4, kind: input, shape index: {}]   ;;  %s1206_s5 = inlined_call_operand.hbm [shape: f32[2,8,128], index: 5, kind: output, shape index: {}]  }
   0x1   :  { %1211 = sst [smem:[#allocation14_spill]] %s1201_s0 }
   0x2   :  { %10 = vsyncpa [#allocation7], 0 }
   0x3   :  { %12 = vsyncpa [#allocation7 + $0x1], 0  ;;  %s986_s18 = smov 0   ;;  %s988_s19 = smov 0  }
   0x4   :  { %s990_s20 = smov 0   ;;  %s992_s21 = smov 0  }
   0x5   :  { %s994_s22 = smov 0   ;;  %s996_s23 = smov 0  }
   0x6   :  { %s998_s24 = smov 0   ;;  %s1000_s25 = smov 0  }
   0x7 LB: > { %1212 = sst [smem:[#allocation9_spill]] %s942_s23  ;;  %s744_s26 = sadd.s32 4294967295, %s950_s25   ;;  %s950_s25 = sphi %s1000_s25, %s18_s25   ;;  %s946_s24 = sphi %s998_s24, %s1225_s24   ;;  %s942_s23 = sphi %s996_s23, %s1224_s23   ;;  %s938_s22 = sphi %s994_s22, %s1223_s22   ;;  %s934_s21 = sphi %s992_s21, %s1222_s21   ;;  %s930_s20 = sphi %s990_s20, %s1228_s20   ;;  %s926_s19 = sphi %s988_s19, %s1227_s19   ;;  %s922_s18 = sphi %s986_s18, %s1226_s18  }
   0x8   : > { %1213 = sst [smem:[#allocation10_spill]] %s946_s24  ;;  %s745_s27 = sadd.s32 4294967294, %s950_s25  }
   0x9   : > { %s36_s28 = sadd.s32 1, %s942_s23  ;;  %s44_s29 = sadd.s32 1, %s946_s24 }
   0xa   : > { %p38_p0 = scmp.ge.s32.totalorder %s36_s28, 4  ;;  %p197_p1 = scmp.ne.s32.totalorder %s930_s20, %s926_s19 }
   0xb   : > { %p198_p2 = scmp.eq.s32.totalorder %s744_s26, 7  ;;  %p203_p4 = scmp.ne.s32.totalorder %s926_s19, %s922_s18 }
   0xc   : > { %s1230_s28 = smov (%p38_p0, %s36_s28), 0  ;;  %s1232_s29 = smov (!%p38_p0, %s44_s29), %s946_s24 }
   0xd   : > { %1214 = sst [smem:[#allocation11_spill]] %s1230_s28  ;;  %p1035_p3 = por %p198_p2, %p197_p1 }
   0xe   : > { %p46_p5 = scmp.ge.s32.totalorder %s1232_s29, 2  ;;  %p204_p6 = scmp.eq.s32.totalorder %s745_s27, 7 }
   0xf   : > { %p748_p7 = scmp.ge.s32.totalorder %s950_s25, 1  ;;  %p266_p8 = scmp.lt.s32.totalorder %s950_s25, 9 }
  0x10   : > { %s1234_s29 = smov (%p46_p5, %s1232_s29), 0  ;;  %p1045_p9 = por %p204_p6, %p203_p4 }
  0x11   : > { %1216 = sst [smem:[#allocation12_spill]] %s1234_s29  ;;  %p267_p10 = pnand %p748_p7, %p266_p8 }
  0x12   : > { %s182_s7 = ssub.s32 %s946_s24, %s1234_s29  ;;  %s187_s8 = sadd.s32 1, %s930_s20 }
  0x13   : > { %p185_p11 = scmp.eq.s32.totalorder %s182_s7, 0  ;;  %270 = sbr.rel (%p267_p10) target bundleno = 826 (0x33a), region = 40 }
  0x14   : > { %s1207_s10 = sand.u32 (!%p267_p10), 1, %s926_s19   ;;  %p318_p12 = scmp.lt.s32.totalorder (!%p267_p10), %s938_s22, 1 }
  0x15   : > { %s1053_s9 = scalar_select %p185_p11, %s930_s20, %s187_s8  }
  0x16   : > { %s1059_s11 = sshll.u32 (!%p267_p10), %s1207_s10, 3  ;;  %p332_p13 = scmp.lt.s32.totalorder (!%p267_p10), %s934_s21, 3 }
  0x17   : > { %1218 = sst [smem:[#allocation13_spill]] %s1053_s9  ;;  %p355_p0 = scmp.eq.s32.totalorder (!%p267_p10), %s934_s21, 0 }
  0x18   : > { %vm351_vm0 = vcmask 7168   ;;  %v952_v0 = vmov -inf   ;;  %v953_v1 = vmov 0.0   ;;  %s319_s12 = scalar_select %p318_p12, %s938_s22, 1  ;;  %v954_v2 = vmov (%p355_p0), 0.0  }
  0x19   : > { %352 = vst.msk [vmem:[#allocation2] sm:$0xff] %vm351_vm0, %v952_v0  ;;  %s333_s13 = scalar_select %p332_p13, %s934_s21, 3 }
  0x1a   : > { %353 = vst.msk [vmem:[#allocation3] sm:$0xff] %vm351_vm0, %v953_v1  ;;  %s750_s14 = sshll.u32 %s319_s12, 3  ;;  %s1219_s0 = sld [smem:[#allocation14_spill]] }
  0x1b   : > { %354 = vst [vmem:[#allocation4] sm:$0xff] %v953_v1  ;;  %s1075_s7 = scalar_lea.vmem %s1202_s1, %s750_s14  ;;  %s767_s8 = sshll.u32 %s333_s13, 7 }
  0x1c   : > { %s1080_s28 = scalar_lea.vmem %s1203_s2, %s767_s8  ;;  %s1085_s12 = scalar_lea.vmem %s1204_s3, %s767_s8  ;;  %360 = vst [vmem:[#allocation5] sm:$0xff] (%p355_p0), %v954_v2 }
  0x1d   : > { %s1090_s16 = scalar_lea.vmem %s1205_s4, %s767_s8  ;;  %359 = sbr.rel (!%p355_p0) target bundleno = 34 (0x22), region = 48 }
  0x20   : > { %s1070_s17 = scalar_lea.vmem %s1219_s0, %s750_s14  ;;  %s317_s0 = scalar_lea.vmem [#allocation6], %s1059_s11 }
  0x22 PF: > { %v402_v3 = vld [vmem:[%s1085_s12 + $0x78] sm:$0xff]  ;;  %v401_v4 = vld [vmem:[%s1085_s12 + $0x70] sm:$0xff]  ;;  %v400_v7 = vld [vmem:[%s1085_s12 + $0x68] sm:$0xff]  ;;  %vm479_vm1 = vcmask 64512   ;;  %v507_v50 = vlaneseq  ;;  %v955_v61 = vmov 0   ;;  %p589_p1 = scmp.eq.s32.totalorder %s934_s21, 3 }
  0x23   : > { %v386_v5 = vld [vmem:[%s1080_s28 + $0x78] sm:$0xff]  ;;  %439 = vmatpush.msra.mxu1 %v402_v3  ;;  %v385_v6 = vld [vmem:[%s1080_s28 + $0x70] sm:$0xff]  ;;  %v384_v8 = vld [vmem:[%s1080_s28 + $0x68] sm:$0xff]  ;;  %847 = vset.pattern.permute.xlu0 %v955_v61 }
  0x24   : > { %419 = vmatpush.msra.mxu0 %v386_v5  ;;  %v399_v9 = vld [vmem:[%s1085_s12 + $0x60] sm:$0xff]  ;;  %v398_v11 = vld [vmem:[%s1085_s12 + $0x58] sm:$0xff]  ;;  %v397_v13 = vld [vmem:[%s1085_s12 + $0x50] sm:$0xff]  ;;  %v508_v53 = vshrl.u32 %v507_v50, 7  ;;  %v512_v54 = vand.u32 127, %v507_v50  ;;  %848 = vset.pattern.permute.xlu1 %v955_v61 }
  0x25   : > { %440 = vmatpush.msra.mxu1 %v401_v4  ;;  %v383_v10 = vld [vmem:[%s1080_s28 + $0x60] sm:$0xff]  ;;  %v382_v12 = vld [vmem:[%s1080_s28 + $0x58] sm:$0xff]  ;;  %v381_v14 = vld [vmem:[%s1080_s28 + $0x50] sm:$0xff]  ;;  %849 = vset.pattern.permute.xlu2 %v955_v61 }
  0x26   : > { %420 = vmatpush.msra.mxu0 %v385_v6  ;;  %v396_v15 = vld [vmem:[%s1085_s12 + $0x48] sm:$0xff]  ;;  %v395_v17 = vld [vmem:[%s1085_s12 + $0x40] sm:$0xff]  ;;  %v394_v19 = vld [vmem:[%s1085_s12 + $0x38] sm:$0xff]  ;;  %vm515_vm2 = vcmp.ge.s32.totalorder %v508_v53, %v512_v54 }
  0x27   : > { %441 = vmatpush.msra.mxu1 %v400_v7  ;;  %v380_v16 = vld [vmem:[%s1080_s28 + $0x48] sm:$0xff]  ;;  %v379_v18 = vld [vmem:[%s1080_s28 + $0x40] sm:$0xff]  ;;  %v378_v20 = vld [vmem:[%s1080_s28 + $0x38] sm:$0xff] }
  0x28   : > { %421 = vmatpush.msra.mxu0 %v384_v8  ;;  %v393_v21 = vld [vmem:[%s1085_s12 + $0x30] sm:$0xff]  ;;  %v392_v23 = vld [vmem:[%s1085_s12 + $0x28] sm:$0xff]  ;;  %v391_v25 = vld [vmem:[%s1085_s12 + $0x20] sm:$0xff] }
  0x29   : > { %442 = vmatpush.msra.mxu1 %v399_v9  ;;  %v377_v22 = vld [vmem:[%s1080_s28 + $0x30] sm:$0xff]  ;;  %v376_v24 = vld [vmem:[%s1080_s28 + $0x28] sm:$0xff]  ;;  %v375_v26 = vld [vmem:[%s1080_s28 + $0x20] sm:$0xff] }
  0x2a   : > { %422 = vmatpush.msra.mxu0 %v383_v10  ;;  %v390_v27 = vld [vmem:[%s1085_s12 + $0x18] sm:$0xff]  ;;  %v389_v29 = vld [vmem:[%s1085_s12 + $0x10] sm:$0xff]  ;;  %v388_v31 = vld [vmem:[%s1085_s12 + $0x8] sm:$0xff] }
  0x2b   : > { %443 = vmatpush.msra.mxu1 %v398_v11  ;;  %v374_v28 = vld [vmem:[%s1080_s28 + $0x18] sm:$0xff]  ;;  %v373_v30 = vld [vmem:[%s1080_s28 + $0x10] sm:$0xff]  ;;  %v372_v32 = vld [vmem:[%s1080_s28 + $0x8] sm:$0xff] }
  0x2c   : > { %423 = vmatpush.msra.mxu0 %v382_v12  ;;  %v387_v33 = vld [vmem:[%s1085_s12] sm:$0xff]  ;;  %v418_v39 = vld [vmem:[%s1090_s16 + $0x78] sm:$0xff]  ;;  %v417_v40 = vld [vmem:[%s1090_s16 + $0x70] sm:$0xff] }
  0x2d   : > { %444 = vmatpush.msra.mxu1 %v397_v13  ;;  %v371_v34 = vld [vmem:[%s1080_s28] sm:$0xff]  ;;  %459 = vmatpush.msra.mxu2 %v418_v39  ;;  %v416_v41 = vld [vmem:[%s1090_s16 + $0x68] sm:$0xff]  ;;  %v414_v43 = vld [vmem:[%s1090_s16 + $0x58] sm:$0xff] }
  0x2e   : > { %424 = vmatpush.msra.mxu0 %v381_v14  ;;  %v370_v35 = vld [vmem:[%s1075_s7] sm:$0xff]  ;;  %v413_v44 = vld [vmem:[%s1090_s16 + $0x50] sm:$0xff]  ;;  %v412_v45 = vld [vmem:[%s1090_s16 + $0x48] sm:$0xff] }
  0x2f   : > { %445 = vmatpush.msra.mxu1 %v396_v15  ;;  %v369_v36 = vld [vmem:[%s1070_s17] sm:$0xff]  ;;  %460 = vmatpush.msra.mxu2 %v417_v40  ;;  %v410_v47 = vld [vmem:[%s1090_s16 + $0x38] sm:$0xff]  ;;  %v409_v48 = vld [vmem:[%s1090_s16 + $0x30] sm:$0xff] }
  0x30   : > { %425 = vmatpush.msra.mxu0 %v380_v16  ;;  %v415_v42 = vld [vmem:[%s1090_s16 + $0x60] sm:$0xff]  ;;  %v408_v49 = vld [vmem:[%s1090_s16 + $0x28] sm:$0xff]  ;;  %v406_v52 = vld [vmem:[%s1090_s16 + $0x18] sm:$0xff] }
  0x31   : > { %446 = vmatpush.msra.mxu1 %v395_v17  ;;  %461 = vmatpush.msra.mxu2 %v416_v41  ;;  %v411_v46 = vld [vmem:[%s1090_s16 + $0x40] sm:$0xff]  ;;  %v405_v55 = vld [vmem:[%s1090_s16 + $0x10] sm:$0xff]  ;;  %v404_v56 = vld [vmem:[%s1090_s16 + $0x8] sm:$0xff] }
  0x32   : > { %426 = vmatpush.msra.mxu0 %v379_v18  ;;  %v407_v51 = vld [vmem:[%s1090_s16 + $0x20] sm:$0xff]  ;;  %v533_v10 = vld [vmem:[#allocation3] sm:$0xff]  ;;  %v541_v16 = vld [vmem:[#allocation4] sm:$0xff] }
  0x33   : > { %447 = vmatpush.msra.mxu1 %v394_v19  ;;  %462 = vmatpush.msra.mxu2 %v415_v42  ;;  %v403_v57 = vld [vmem:[%s1090_s16] sm:$0xff] }
  0x34   : > { %427 = vmatpush.msra.mxu0 %v378_v20  ;;  %v517_v62 = vld [vmem:[#allocation2] sm:$0xff] }
  0x35   : > { %448 = vmatpush.msra.mxu1 %v393_v21  ;;  %463 = vmatpush.msra.mxu2 %v414_v43  ;;  %v577_v21 = vld [vmem:[#allocation5] sm:$0xff] }
  0x36   : > { %428 = vmatpush.msra.mxu0 %v377_v22 }
  0x37   : > { %449 = vmatpush.msra.mxu1 %v392_v23  ;;  %464 = vmatpush.msra.mxu2 %v413_v44 }
  0x38   : > { %429 = vmatpush.msra.mxu0 %v376_v24 }
  0x39   : > { %450 = vmatpush.msra.mxu1 %v391_v25  ;;  %465 = vmatpush.msra.mxu2 %v412_v45 }
  0x3a   : > { %430 = vmatpush.msra.mxu0 %v375_v26 }
  0x3b   : > { %451 = vmatpush.msra.mxu1 %v390_v27  ;;  %466 = vmatpush.msra.mxu2 %v411_v46 }
  0x3c   : > { %431 = vmatpush.msra.mxu0 %v374_v28 }
  0x3d   : > { %452 = vmatpush.msra.mxu1 %v389_v29  ;;  %467 = vmatpush.msra.mxu2 %v410_v47 }
  0x3e   : > { %432 = vmatpush.msra.mxu0 %v373_v30 }
  0x3f   : > { %453 = vmatpush.msra.mxu1 %v388_v31  ;;  %468 = vmatpush.msra.mxu2 %v409_v48 }
  0x40   : > { %433 = vmatpush.msra.mxu0 %v372_v32 }
  0x41   : > { %454 = vmatpush.msra.mxu1 %v387_v33  ;;  %469 = vmatpush.msra.mxu2 %v408_v49 }
  0x42   : > { %434 = vmatpush.msra.mxu0 %v371_v34  ;;  %455 = vmatmul.f32.vlgmr.msra.gmra.mxu1 %v370_v35 }
  0x43   : > { %435 = vmatmul.f32.vlgmr.msra.gmra.mxu0 %v369_v36  ;;  %470 = vmatpush.msra.mxu2 %v407_v51 }
  0x45   : > { %471 = vmatpush.msra.mxu2 %v406_v52 }
  0x47   : > { %472 = vmatpush.msra.mxu2 %v405_v55 }
  0x49   : > { %473 = vmatpush.msra.mxu2 %v404_v56 }
  0x4b   : > { %474 = vmatpush.msra.mxu2 %v403_v57 }
  0x4c   : > { %475 = vmatmul.f32.vlgmr.msra.gmra.mxu2 %v370_v35 }
  0xbf   : > { %v456_v37 = vpop.f32.mrf.mxu1 }
  0xc0   : > { %759 = vmatpush.xpose.msk.msra.mxu3 %vm479_vm1, %v456_v37  ;;  %v436_v38 = vpop.f32.mrf.mxu0 }
  0xc3   : > { %760 = vmatmul.msk.f32.vlgmr.msra.gmra.mxu3 %vm479_vm1, %v436_v38 }
  0xcf   : > { %v476_v2 = vpop.f32.mrf.mxu2 }
  0xd0   : > { %566 = vmatpush.msrb.mxu3 %v476_v2 }
 0x146   : > { %v503_v58 = vpop.f32.mrf.mxu3 }
 0x147   : > { %v516_v59 = vsel %vm515_vm2, %v503_v58, -inf }
 0x148   : > { %v518_v60 = vsel %vm479_vm1, %v516_v59, -inf }
 0x149   : > { %519 = vmax.xlane.f32.xlu0 %v518_v60 }
 0x1bc   : > { %v520_v63 = vpop.xlane.xlu0 %519 }
 0x1bd   : > { %v521_v0 = vmax.f32 %v517_v62, %v520_v63 }
 0x1bf   : > { %v522_v1 = vsub.f32 %v517_v62, %v521_v0  ;;  %573 = vst.msk [vmem:[#allocation2] sm:$0xff] %vm351_vm0, %v521_v0  ;;  %527 = vperm.xlu0 %847, %v521_v0  }
 0x1c1   : > { %v523_v8 = vmul.f32 1.442695, %v522_v1 }
 0x231   : > { %v528_v3 = vpop.permute.xlu0 %527 }
 0x232   : > { %v530_v4 = vsub.f32 %v516_v59, %v528_v3 }
 0x234   : > { %v531_v5 = vmul.f32 1.442695, %v530_v4 }
 0x236   : > { %850 = vpow2.f32 %v531_v5 }
 0x237   : > { %852 = vpow2.f32 %v523_v8 }
 0x23c   : > { %v851_v6 = vpop.eup %850 }
 0x23d   : > { %761 = vmatmul.msk.f32.vlgmr.msrb.gmra.mxu3 %vm479_vm1, %v851_v6  ;;  %v535_v7 = vsel %vm479_vm1, %v851_v6, 0.0  ;;  %v853_v9 = vpop.eup %852 }
 0x23e   : > { %536 = vadd.xlane.f32.xlu1 %v535_v7  ;;  %v534_v11 = vmul.f32 %v853_v9, %v533_v10 }
 0x257   : > { %544 = vperm.xlu1 %848, %v853_v9  }
 0x2b1   : > { %v537_v12 = vpop.xlane.xlu1 %536 }
 0x2b2   : > { %v538_v13 = vadd.f32 %v537_v12, %v534_v11 }
 0x2b4   : > { %540 = vst.msk [vmem:[#allocation3] sm:$0xff] %vm351_vm0, %v538_v13 }
 0x2bb   : > { %v579_v14 = vld [vmem:[#allocation3] sm:$0xff] }
 0x2bc   : > { %854 = vrcp.f32 %v579_v14 }
 0x2c0   : > { %v568_v19 = vpop.f32.mrf.mxu3 }
 0x2c2   : > { %v855_v15 = vpop.eup %854 }
 0x2c3   : > { %583 = vperm.xlu2 %849, %v855_v15  }
 0x2c9   : > { %v545_v17 = vpop.permute.xlu1 %544 }
 0x2ca   : > { %v547_v18 = vmul.f32 %v545_v17, %v541_v16 }
 0x2cc   : > { %v571_v20 = vadd.f32 %v568_v19, %v547_v18 }
 0x2ce   : > { %572 = vst [vmem:[#allocation4] sm:$0xff] %v571_v20 }
 0x31d   : > { %v584_v22 = vpop.permute.xlu2 %583 }
 0x31e   : > { %v586_v23 = vmul.f32 %v584_v22, %v571_v20  ;;  %593 = sbr.rel (!%p589_p1) target bundleno = 811 (0x32b), region = 60 }
 0x320   : > { %v587_v24 = vadd.f32 %v586_v23, %v577_v21 }
 0x322   : > { %588 = vst [vmem:[#allocation5] sm:$0xff] %v587_v24 }
 0x329   : > { %v594_v25 = vld [vmem:[#allocation5] sm:$0xff] }
 0x32a   : > { %595 = vst [vmem:[%s317_s0] sm:$0xff] %v594_v25 }
 0x32b PF: > { %s764_s23 = sshll.u32 %s938_s22, 3  ;;  %s610_s9 = sshll.u32 %s317_s0, 4  ;;  %s611_s9 = int_to_ptr.vmem [resolvable:$true] %s610_s9 }
 0x32c   : > { %s608_s29 = scalar_lea.hbm %s1206_s5, %s764_s23  ;;  %s1220_s21 = sand.u32 1, %s926_s19  }
 0x32d   : > { %s612_s10 = sshll.u32 %s608_s29, 4  ;;  %s597_s13 = scalar_lea.sflag [#allocation7], %s1220_s21  ;;  %s613_s10 = int_to_ptr.hbm [resolvable:$true] %s612_s10 }
 0x32e   : > { %s870_s14 = sshra.s32 %s613_s10, 4  ;;  %s876_s27 = scalar_lea.hbm %s1206_s5, 16  ;;  %s871_s14 = int_to_ptr.hbm [resolvable:$true] %s870_s14 }
 0x32f   : > { %s872_s17 = scalar_lea.hbm %s871_s14, 8  ;;  %p877_p6 = scmp.lt.s32.totalorder %s871_s14, %s1206_s5 }
 0x330   : > { %p873_p2 = scmp.ne.s32.totalorder %s871_s14, %s872_s17  ;;  %p878_p7 = scmp.lt.s32.totalorder %s876_s27, %s872_s17 }
 0x332   : > { %p874_p4 = pnand %p873_p2, %p1035_p3  ;;  %p879_p8 = por %p878_p7, %p877_p6 }
 0x334   : > { %p875_p5 = pneg %p874_p4 }
 0x336   : > { %p880_p10 = pnand %p879_p8, %p875_p5 }
 0x338   : > { %883 = shalt.err (!%p880_p10)
}
 0x339   : > { %772 = dma.vmem_to_hbm [thread:$0]  (%p1035_p3), %s611_s9, 128, %s613_s10, %s597_s13  }
 0x33a PF: > { %p778_p11 = scmp.ge.s32.totalorder %s950_s25, 2  ;;  %s624_s0 = sand.u32 1, %s922_s18  }
 0x33b   : > { %s625_s11 = scalar_lea.sflag [#allocation7], %s624_s0 }
 0x33c   : > { %p775_p12 = pnand %p778_p11, %p1045_p9 }
 0x33e   : > { %p776_p13 = pneg %p775_p12 }
 0x340   : > { %917 = dma.done.wait (%p776_p13), %s625_s11, 128  }
 0x341   : > { %919 = vsyncadd (%p776_p13), %s625_s11, 4294967168  ;;  %s18_s25 = sadd.s32 1, %s950_s25   ;;  %s1221_s12 = sld [smem:[#allocation13_spill]] }
 0x342   : > { %p15_p0 = scmp.ge.s32.totalorder %s18_s25, 10   ;;  %s1222_s21 = sld [smem:[#allocation9_spill]] }
 0x343   : > { %s1223_s22 = sld [smem:[#allocation10_spill]]  ;;  %s1226_s18 = smov %s926_s19 }
 0x344   : > { %s1224_s23 = sld [smem:[#allocation11_spill]]  ;;  %s1227_s19 = smov %s930_s20 }
 0x345   : > { %s1225_s24 = sld [smem:[#allocation12_spill]]  ;;  %17 = sbr.rel (!%p15_p0) target bundleno = 7 (0x7), region = 107 }
 0x347   : > { %s1228_s20 = smov %s1221_s12 }
 0x34a   :  { %631 = vsyncpa [#allocation7], 1 }
 0x34b   :  { %633 = vsyncpa [#allocation7 + $0x1], 1 }

</bundles_post_ra>
